<compile_context>
chip_gen: v7x
topology: tpu7x:2x2x1
jax: 0.10.0
libtpu: 0.0.40
codegen_flags: <defaults>
</compile_context>

<pallas_src>
import math

import jax
import jax.numpy as jnp
from jax.experimental import pallas as pl
from jax.experimental.pallas import tpu as pltpu


def _round_up(n, m):
    return ((n + m - 1) // m) * m


def _pose_regressor_kernel(x_ref, wh_ref, bh_ref, wo_ref, bo_ref, o_ref):
    # Hidden layer: (tB, D)bf16 @ (D, CH)bf16 -> f32 accumulate, + (1, CH)f32
    h = jnp.dot(x_ref[...], wh_ref[...], preferred_element_type=jnp.float32)
    h = h + bh_ref[...]
    # Exact GELU (matches torch.nn.functional.gelu default), computed in f32:
    #   0.5 * x * (1 + erf(x / sqrt(2)))
    h = 0.5 * h * (1.0 + jax.lax.erf(h * (1.0 / math.sqrt(2.0))))
    # Output layer: cast GELU output to bf16 for the MXU, f32 accumulate.
    y = jnp.dot(h.astype(wo_ref.dtype), wo_ref[...],
                preferred_element_type=jnp.float32)
    o_ref[...] = (y + bo_ref[...]).astype(o_ref.dtype)


def pose_regressor(x, w_h, b_h, w_o, b_o, *, block_b=None,
                   compute_dtype=jnp.bfloat16):
    """x: (B, D); w_h: (D, CH); b_h: (CH,); w_o: (CH, O); b_o: (O,).

    Returns (B, O) float32.  All matmul operands are cast to `compute_dtype`
    (bf16) for MXU throughput / HBM bandwidth; accumulation and GELU are f32.
    """
    B, D = x.shape
    CH = w_h.shape[1]
    O = w_o.shape[1]

    # ---- layout plumbing (all outside the kernel) --------------------------
    # Lane-dense output: pad the tiny output dim to a full 128-lane multiple
    # so stores are unmasked and the 2nd matmul uses full MXU columns; padded
    # columns of W_o / b_o are zero and are sliced off after the call.
    O_pad = _round_up(max(O, 128), 128)
    w_o_p = jnp.pad(w_o, ((0, 0), (0, O_pad - O))).astype(compute_dtype)
    b_o_p = jnp.pad(b_o, (0, O_pad - O)).reshape(1, O_pad).astype(jnp.float32)

    # Batch tiling: whole batch in one grid step for small B; 256-row tiles
    # (a multiple of 128, so v5e's 128-wide MXU is also filled) for large B.
    # Pad B so there is no ragged tail block.
    if block_b is None:
        block_b = min(256, _round_up(B, 8))
    B_pad = _round_up(B, block_b)
    x_p = x if B_pad == B else jnp.pad(x, ((0, B_pad - B), (0, 0)))

    # bf16 matmul inputs; biases stay f32 (added to the f32 accumulator).
    x_p = x_p.astype(compute_dtype)
    w_h_c = w_h.astype(compute_dtype)
    b_h2 = b_h.reshape(1, CH).astype(jnp.float32)

    grid = (B_pad // block_b,)
    # NOTE: at larger decoder_dim the constant-index weight blocks could be
    # single-buffered (pipeline_mode=pl.Buffered) to save VMEM; unnecessary at
    # these shapes (< 2 MiB of weights even double-buffered).
    y = pl.pallas_call(
        _pose_regressor_kernel,
        out_shape=jax.ShapeDtypeStruct((B_pad, O_pad), jnp.float32),
        grid_spec=pl.GridSpec(
            grid=grid,
            in_specs=[
                pl.BlockSpec((block_b, D), lambda i: (i, 0)),   # x tile
                pl.BlockSpec((D, CH), lambda i: (0, 0)),        # W_h (resident)
                pl.BlockSpec((1, CH), lambda i: (0, 0)),        # b_h
                pl.BlockSpec((CH, O_pad), lambda i: (0, 0)),    # W_o (padded)
                pl.BlockSpec((1, O_pad), lambda i: (0, 0)),     # b_o (padded)
            ],
            out_specs=pl.BlockSpec((block_b, O_pad), lambda i: (i, 0)),
        ),
        compiler_params=pltpu.CompilerParams(
            dimension_semantics=("parallel",),
        ),
    )(x_p, w_h_c, b_h2, w_o_p, b_o_p)

    return y[:B, :O]


def _xavier_uniform(key, fan_in, fan_out, dtype=jnp.float32):
    # nn.init.xavier_uniform_: U(-a, a), a = sqrt(6 / (fan_in + fan_out))
    a = math.sqrt(6.0 / (fan_in + fan_out))
    return jax.random.uniform(key, (fan_in, fan_out), dtype=dtype,
                              minval=-a, maxval=a)


def _linear_bias_default(key, fan_in, n, dtype=jnp.float32):
    # nn.Linear default bias init: U(-1/sqrt(fan_in), 1/sqrt(fan_in))
    b = 1.0 / math.sqrt(fan_in)
    return jax.random.uniform(key, (n,), dtype=dtype, minval=-b, maxval=b)


if __name__ == "__main__":
    # Small but representative shapes: decoder_dim=256, ch=1024, output_dim=4
    B, D, CH, O = 16, 256, 1024, 4
    key = jax.random.PRNGKey(0)
    k_x, k_wh, k_bh, k_wo, k_bo = jax.random.split(key, 5)

    x = jax.random.normal(k_x, (B, D), dtype=jnp.float32)
    w_h = _xavier_uniform(k_wh, D, CH)          # stored as (in, out)
    b_h = _linear_bias_default(k_bh, D, CH)
    w_o = _xavier_uniform(k_wo, CH, O)          # stored as (in, out)
    b_o = _linear_bias_default(k_bo, CH, O)

    out = pose_regressor(x, w_h, b_h, w_o, b_o)
    out = jax.block_until_ready(out)
    assert out.shape == (B, O)

    # Reference 1: same bf16 quantization of the matmul inputs, f32 accumulate
    # (validates the kernel itself; should match tightly).
    xb = x.astype(jnp.bfloat16)
    whb = w_h.astype(jnp.bfloat16)
    wob = w_o.astype(jnp.bfloat16)
    h_ref = jnp.dot(xb, whb, preferred_element_type=jnp.float32) + b_h
    h_ref = 0.5 * h_ref * (1.0 + jax.lax.erf(h_ref / math.sqrt(2.0)))
    y_ref = jnp.dot(h_ref.astype(jnp.bfloat16), wob,
                    preferred_element_type=jnp.float32) + b_o
    assert jnp.allclose(out, y_ref, atol=2e-3, rtol=2e-3), \
        "mismatch vs bf16-quantized reference"

    # Reference 2: full f32 math (loose sanity check on the bf16 quantization).
    h32 = jnp.dot(x, w_h) + b_h
    h32 = 0.5 * h32 * (1.0 + jax.lax.erf(h32 / math.sqrt(2.0)))
    y32 = jnp.dot(h32, w_o) + b_o
    assert jnp.allclose(out, y32, atol=5e-2, rtol=5e-2), \
        "mismatch vs f32 reference"

    print("KERNEL_OK")
</pallas_src>

<mosaic_0001>
module attributes {stable_mosaic.version = 11 : i64} {
  func.func @_pose_regressor_kernel(%arg0: i32, %arg1: memref<16x256xbf16, #tpu.memory_space<vmem>>, %arg2: memref<256x1024xbf16, #tpu.memory_space<vmem>>, %arg3: memref<1x1024xf32, #tpu.memory_space<vmem>>, %arg4: memref<1024x128xbf16, #tpu.memory_space<vmem>>, %arg5: memref<1x128xf32, #tpu.memory_space<vmem>>, %arg6: memref<16x128xf32, #tpu.memory_space<vmem>>) attributes {dimension_semantics = [#tpu.dimension_semantics<parallel>], iteration_bounds = array<i64: 1>, scalar_prefetch = 0 : i64, scratch_operands = 0 : i64, tpu.core_type = #tpu.core_type<tc>, window_params = [{transform_indices = @transform_0, window_bounds = array<i64: 16, 256>}, {pipeline_mode = #tpu.pipeline_mode<synchronous>, transform_indices = @transform_1, window_bounds = array<i64: 256, 1024>}, {pipeline_mode = #tpu.pipeline_mode<synchronous>, transform_indices = @transform_2, window_bounds = array<i64: 1, 1024>}, {pipeline_mode = #tpu.pipeline_mode<synchronous>, transform_indices = @transform_3, window_bounds = array<i64: 1024, 128>}, {pipeline_mode = #tpu.pipeline_mode<synchronous>, transform_indices = @transform_4, window_bounds = array<i64: 1, 128>}, {transform_indices = @transform_5, window_bounds = array<i64: 16, 128>}]} {
    %c0 = arith.constant 0 : index
    %c0_0 = arith.constant 0 : index
    %0 = vector.load %arg1[%c0, %c0_0] : memref<16x256xbf16, #tpu.memory_space<vmem>>, vector<16x256xbf16>
    %c0_1 = arith.constant 0 : index
    %c0_2 = arith.constant 0 : index
    %1 = vector.load %arg2[%c0_1, %c0_2] : memref<256x1024xbf16, #tpu.memory_space<vmem>>, vector<256x1024xbf16>
    %cst = arith.constant dense<0.000000e+00> : vector<16x1024xf32>
    %2 = tpu.matmul %0, %1, %cst {dimension_numbers = #tpu.dot_dimension_numbers<[1], [0], [0], [1], [0, 0, 1, 1], [], []>} : vector<16x256xbf16>, vector<256x1024xbf16>, vector<16x1024xf32> -> vector<16x1024xf32>
    %c0_3 = arith.constant 0 : index
    %c0_4 = arith.constant 0 : index
    %3 = vector.load %arg3[%c0_3, %c0_4] : memref<1x1024xf32, #tpu.memory_space<vmem>>, vector<1x1024xf32>
    %4 = vector.broadcast %3 : vector<1x1024xf32> to vector<16x1024xf32>
    %5 = arith.addf %2, %4 : vector<16x1024xf32>
    %cst_5 = arith.constant 5.000000e-01 : f32
    %6 = vector.broadcast %cst_5 : f32 to vector<16x1024xf32>
    %7 = arith.mulf %6, %5 : vector<16x1024xf32>
    %cst_6 = arith.constant 0.707106769 : f32
    %8 = vector.broadcast %cst_6 : f32 to vector<16x1024xf32>
    %9 = arith.mulf %5, %8 : vector<16x1024xf32>
    %10 = math.erf %9 : vector<16x1024xf32>
    %cst_7 = arith.constant 1.000000e+00 : f32
    %11 = vector.broadcast %cst_7 : f32 to vector<16x1024xf32>
    %12 = arith.addf %11, %10 : vector<16x1024xf32>
    %13 = arith.mulf %7, %12 : vector<16x1024xf32>
    %14 = arith.truncf %13 : vector<16x1024xf32> to vector<16x1024xbf16>
    %c0_8 = arith.constant 0 : index
    %c0_9 = arith.constant 0 : index
    %15 = vector.load %arg4[%c0_8, %c0_9] : memref<1024x128xbf16, #tpu.memory_space<vmem>>, vector<1024x128xbf16>
    %cst_10 = arith.constant dense<0.000000e+00> : vector<16x128xf32>
    %16 = tpu.matmul %14, %15, %cst_10 {dimension_numbers = #tpu.dot_dimension_numbers<[1], [0], [0], [1], [0, 0, 1, 1], [], []>} : vector<16x1024xbf16>, vector<1024x128xbf16>, vector<16x128xf32> -> vector<16x128xf32>
    %c0_11 = arith.constant 0 : index
    %c0_12 = arith.constant 0 : index
    %17 = vector.load %arg5[%c0_11, %c0_12] : memref<1x128xf32, #tpu.memory_space<vmem>>, vector<1x128xf32>
    %18 = vector.broadcast %17 : vector<1x128xf32> to vector<16x128xf32>
    %19 = arith.addf %16, %18 : vector<16x128xf32>
    %c0_13 = arith.constant 0 : index
    %c0_14 = arith.constant 0 : index
    %20 = vector.load %arg6[%c0_13, %c0_14] : memref<16x128xf32, #tpu.memory_space<vmem>>, vector<16x128xf32>
    tpu.vector_store %arg6[%c0_13, %c0_14], %19 {strides = array<i32>} : memref<16x128xf32, #tpu.memory_space<vmem>>, vector<16x128xf32>,
    return
  }
  func.func @transform_0(%arg0: i32) -> (i32, i32) {
    %c0_i32 = arith.constant 0 : i32
    %c0_i32_0 = arith.constant 0 : i32
    return %arg0, %c0_i32 : i32, i32
  }
  func.func @transform_1(%arg0: i32) -> (i32, i32) {
    %c0_i32 = arith.constant 0 : i32
    %c0_i32_0 = arith.constant 0 : i32
    %c0_i32_1 = arith.constant 0 : i32
    return %c0_i32, %c0_i32_0 : i32, i32
  }
  func.func @transform_2(%arg0: i32) -> (i32, i32) {
    %c0_i32 = arith.constant 0 : i32
    %c0_i32_0 = arith.constant 0 : i32
    %c0_i32_1 = arith.constant 0 : i32
    return %c0_i32, %c0_i32_0 : i32, i32
  }
  func.func @transform_3(%arg0: i32) -> (i32, i32) {
    %c0_i32 = arith.constant 0 : i32
    %c0_i32_0 = arith.constant 0 : i32
    %c0_i32_1 = arith.constant 0 : i32
    return %c0_i32, %c0_i32_0 : i32, i32
  }
  func.func @transform_4(%arg0: i32) -> (i32, i32) {
    %c0_i32 = arith.constant 0 : i32
    %c0_i32_0 = arith.constant 0 : i32
    %c0_i32_1 = arith.constant 0 : i32
    return %c0_i32, %c0_i32_0 : i32, i32
  }
  func.func @transform_5(%arg0: i32) -> (i32, i32) {
    %c0_i32 = arith.constant 0 : i32
    %c0_i32_0 = arith.constant 0 : i32
    return %arg0, %c0_i32 : i32, i32
  }
}

</mosaic_0001>

<bundles_post_ra>
// kernel: tpu_custom_call.1
= control target key start
LH: loop header
LB: loop body
LE: loop exit
PB: predicated region body
PF: predicated region fallthrough
CT: control target
= control target key end

     0   :  { %10 = vsyncpa [#allocation3], 0  ;;  %s2521_s0 = inlined_call_operand.hbm [shape: bf16[16,256], index: 0, kind: input, shape index: {}]   ;;  %s2522_s1 = inlined_call_operand.hbm [shape: bf16[256,1024], index: 1, kind: input, shape index: {}]   ;;  %s2523_s2 = inlined_call_operand.hbm [shape: f32[1,1024], index: 2, kind: input, shape index: {}]   ;;  %s2524_s3 = inlined_call_operand.hbm [shape: bf16[1024,128], index: 3, kind: input, shape index: {}]   ;;  %s2525_s4 = inlined_call_operand.vmem [shape: f32[1,128], index: 4, kind: input, shape index: {}]   ;;  %s2526_s5 = inlined_call_operand.hbm [shape: f32[16,128], index: 5, kind: output, shape index: {}]  }
   0x1   :  { %11 = vsyncpa [#allocation6], 0 }
   0x2   :  { %12 = vsyncpa [#allocation9], 0 }
   0x3   :  { %13 = vsyncpa [#allocation4], 0  ;;  %s2372_s18 = smov [#allocation5]   ;;  %s2254_s22 = scalar_lea.hbm %s2522_s1, 16384 }
   0x4   :  { %s31_s19 = sshll.u32 %s2372_s18, 4  ;;  %p2255_p0 = scmp.ne.s32.totalorder %s2522_s1, %s2254_s22  ;;  %s32_s19 = int_to_ptr.vmem [resolvable:$true] %s31_s19 }
   0x5   :  { %p2258_p1 = scmp.lt.u32.totalorder %s2254_s22, %s2522_s1 }
   0x7   :  { %p2260_p2 = pnand %p2258_p1, %p2255_p0 }
   0x9   :  { %2263 = shalt.err (!%p2260_p2)
}
   0xa   :  { %s2264_s27 = scalar_lea.vmem %s32_s19, 16384  ;;  %p2269_p4 = scmp.lt.s32.totalorder %s32_s19, %s32_s19 }
   0xb   :  { %p2265_p3 = scmp.ne.s32.totalorder %s32_s19, %s2264_s27  ;;  %p2270_p5 = scmp.lt.s32.totalorder %s2264_s27, %s2264_s27 }
   0xd   :  { %p2271_p6 = por %p2270_p5, %p2269_p4 }
   0xf   :  { %p2272_p7 = pnand %p2271_p6, %p2265_p3 }
  0x11   :  { %2275 = shalt.err (!%p2272_p7)
}
  0x12   :  { %s2373_s28 = smov 512   ;;  %s2374_s29 = smov 32  }
  0x13   :  { %37 = dma.hbm_to_vmem [thread:$0]  %s2522_s1, 16384, %s32_s19, [#allocation6], %s2373_s28, %s2373_s28, %s2374_s29  }
  0x14   :  { %s2375_s7 = smov [#allocation2]   ;;  %s2276_s11 = scalar_lea.hbm %s2521_s0, 256 }
  0x15   :  { %s19_s8 = sshll.u32 %s2375_s7, 4  ;;  %p2277_p8 = scmp.ne.s32.totalorder %s2521_s0, %s2276_s11  ;;  %s20_s8 = int_to_ptr.vmem [resolvable:$true] %s19_s8 }
  0x16   :  { %p2280_p9 = scmp.lt.u32.totalorder %s2276_s11, %s2521_s0 }
  0x18   :  { %p2282_p10 = pnand %p2280_p9, %p2277_p8 }
  0x1a   :  { %2285 = shalt.err (!%p2282_p10)
}
  0x1b   :  { %s2286_s16 = scalar_lea.vmem %s20_s8, 256  ;;  %p2291_p12 = scmp.lt.s32.totalorder %s20_s8, %s20_s8 }
  0x1c   :  { %p2287_p11 = scmp.ne.s32.totalorder %s20_s8, %s2286_s16  ;;  %p2292_p13 = scmp.lt.s32.totalorder %s2286_s16, %s2286_s16 }
  0x1e   :  { %p2293_p0 = por %p2292_p13, %p2291_p12 }
  0x20   :  { %p2294_p1 = pnand %p2293_p0, %p2287_p11 }
  0x22   :  { %2297 = shalt.err (!%p2294_p1)
}
  0x23   :  { %s2376_s1 = smov 128   ;;  %s2377_s17 = smov 8  }
  0x24   :  { %25 = dma.hbm_to_vmem [thread:$0]  %s2521_s0, 256, %s20_s8, [#allocation3], %s2376_s1, %s2376_s1, %s2377_s17  }
  0x25   :  { %s2378_s20 = smov [#allocation7]   ;;  %s2379_s22 = smov [#allocation8]  }
  0x26   :  { %s44_s21 = sshll.u32 %s2378_s20, 4  ;;  %s53_s23 = sshll.u32 %s2379_s22, 4  ;;  %s45_s21 = int_to_ptr.vmem [resolvable:$true] %s44_s21  ;;  %s2440_s23 = int_to_ptr.vmem [resolvable:$true] %s53_s23 }
  0x27   :  { %s2298_s26 = scalar_lea.hbm %s2523_s2, 128 }
  0x28   :  { %p2299_p2 = scmp.ne.s32.totalorder %s2523_s2, %s2298_s26  ;;  %p2302_p3 = scmp.lt.u32.totalorder %s2298_s26, %s2523_s2 }
  0x2a   :  { %p2304_p4 = pnand %p2302_p3, %p2299_p2 }
  0x2c   :  { %2307 = shalt.err (!%p2304_p4)
}
  0x2d   :  { %s2308_s0 = scalar_lea.vmem %s45_s21, 128  ;;  %p2313_p6 = scmp.lt.s32.totalorder %s45_s21, %s45_s21 }
  0x2e   :  { %p2309_p5 = scmp.ne.s32.totalorder %s45_s21, %s2308_s0  ;;  %p2314_p7 = scmp.lt.s32.totalorder %s2308_s0, %s2308_s0 }
  0x30   :  { %p2315_p8 = por %p2314_p7, %p2313_p6 }
  0x32   :  { %p2316_p9 = pnand %p2315_p8, %p2309_p5 }
  0x34   :  { %2319 = shalt.err (!%p2316_p9)
}
  0x35   :  { %47 = dma.hbm_to_vmem [thread:$0]  %s2523_s2, 128, %s45_s21, [#allocation6]  }
  0x36   :  { %s2320_s10 = scalar_lea.hbm %s2524_s3, 8192 }
  0x37   :  { %p2321_p10 = scmp.ne.s32.totalorder %s2524_s3, %s2320_s10  ;;  %p2324_p11 = scmp.lt.u32.totalorder %s2320_s10, %s2524_s3 }
  0x39   :  { %p2326_p12 = pnand %p2324_p11, %p2321_p10 }
  0x3b   :  { %2329 = shalt.err (!%p2326_p12)
}
  0x3c   :  { %s2330_s15 = scalar_lea.vmem %s2440_s23, 8192  ;;  %p2335_p0 = scmp.lt.s32.totalorder %s2440_s23, %s2440_s23 }
  0x3d   :  { %p2331_p13 = scmp.ne.s32.totalorder %s2440_s23, %s2330_s15  ;;  %p2336_p1 = scmp.lt.s32.totalorder %s2330_s15, %s2330_s15 }
  0x3f   :  { %p2337_p2 = por %p2336_p1, %p2335_p0 }
  0x41   :  { %p2338_p3 = pnand %p2337_p2, %p2331_p13 }
  0x43   :  { %2341 = shalt.err (!%p2338_p3)
}
  0x44   :  { %s2380_s2 = smov 64   ;;  %s2381_s16 = smov 4  }
  0x45   :  { %59 = dma.hbm_to_vmem [thread:$0]  %s2524_s3, 8192, %s2440_s23, [#allocation9], %s2380_s2, %s2380_s2, %s2381_s16  }
  0x46   :  { %2364 = dma.done.wait [#allocation3], 256  }
  0x47   :  { %2365 = vsyncadd [#allocation3], 4294967040 }
  0x48   :  { %2366 = dma.done.wait [#allocation6], 16512  }
  0x49   :  { %2367 = vsyncadd [#allocation6], 4294950784 }
  0x4a   :  { %2368 = dma.done.wait [#allocation9], 8192  }
  0x4b   :  { %2369 = vsyncadd [#allocation9], 4294959104  ;;  %v77_v0 = vld [vmem:[#allocation5] sm:$0xff]  ;;  %v78_v2 = vld [vmem:[#allocation5 + $0x8] sm:$0xff] }
  0x4c   :  { %v81_v1 = vld [vmem:[#allocation5 + $0x20] sm:$0xff]  ;;  %v82_v4 = vld [vmem:[#allocation5 + $0x28] sm:$0xff]  ;;  %v2471_v56 = vld [vmem:[#allocation2 + $0x4] ss:$8 sps:$4 sm:$0xff]  }
  0x4d   :  { %v1864_v3 = vcombine.high %v77_v0, %v81_v1  ;;  %v1863_v5 = vcombine.low %v77_v0, %v81_v1  ;;  %v85_v6 = vld [vmem:[#allocation5 + $0x40] sm:$0xff]  ;;  %v1866_v8 = vcombine.high %v78_v2, %v82_v4  ;;  %v1865_v9 = vcombine.low %v78_v2, %v82_v4  ;;  %v86_v11 = vld [vmem:[#allocation5 + $0x48] sm:$0xff]  ;;  %929 = vmatprep.mubr.bf16.mxu0 %v2471_v56 }
  0x4e   :  { %v89_v7 = vld [vmem:[#allocation5 + $0x60] sm:$0xff]  ;;  %v90_v12 = vld [vmem:[#allocation5 + $0x68] sm:$0xff]  ;;  %972 = vmatprep.mubr.bf16.mxu1 %v2471_v56 }
  0x4f   :  { %v1872_v10 = vcombine.high %v85_v6, %v89_v7  ;;  %v93_v13 = vld [vmem:[#allocation5 + $0x80] sm:$0xff]  ;;  %897 = vmatprep.subr.bf16.mxu0 %v1864_v3  ;;  %v1874_v14 = vcombine.high %v86_v11, %v90_v12  ;;  %v94_v16 = vld [vmem:[#allocation5 + $0x88] sm:$0xff]  ;;  %940 = vmatprep.subr.bf16.mxu1 %v1866_v8  ;;  %v1871_v18 = vcombine.low %v85_v6, %v89_v7 }
  0x50   :  { %v97_v15 = vld [vmem:[#allocation5 + $0xa0] sm:$0xff]  ;;  %v98_v17 = vld [vmem:[#allocation5 + $0xa8] sm:$0xff]  ;;  %898 = vmatpush1.bf16.msra.mxu0 %v1863_v5  ;;  %941 = vmatpush1.bf16.msra.mxu1 %v1865_v9  ;;  %v1873_v19 = vcombine.low %v86_v11, %v90_v12 }
  0x51   :  { %899 = vmatprep.subr.bf16.mxu0 %v1872_v10  ;;  %v1880_v20 = vcombine.high %v93_v13, %v97_v15  ;;  %942 = vmatprep.subr.bf16.mxu1 %v1874_v14  ;;  %v1882_v21 = vcombine.high %v94_v16, %v98_v17  ;;  %v101_v22 = vld [vmem:[#allocation5 + $0xc0] sm:$0xff]  ;;  %v102_v24 = vld [vmem:[#allocation5 + $0xc8] sm:$0xff]  ;;  %v1879_v26 = vcombine.low %v93_v13, %v97_v15 }
  0x52   :  { %v105_v23 = vld [vmem:[#allocation5 + $0xe0] sm:$0xff]  ;;  %v106_v25 = vld [vmem:[#allocation5 + $0xe8] sm:$0xff]  ;;  %v1881_v27 = vcombine.low %v94_v16, %v98_v17 }
  0x53   :  { %v1888_v28 = vcombine.high %v101_v22, %v105_v23  ;;  %v1890_v29 = vcombine.high %v102_v24, %v106_v25  ;;  %v109_v30 = vld [vmem:[#allocation5 + $0x100] sm:$0xff]  ;;  %v110_v32 = vld [vmem:[#allocation5 + $0x108] sm:$0xff]  ;;  %v1887_v34 = vcombine.low %v101_v22, %v105_v23  ;;  %v1889_v35 = vcombine.low %v102_v24, %v106_v25 }
  0x54   :  { %900 = vmatpush1.bf16.msra.mxu0 %v1871_v18  ;;  %943 = vmatpush1.bf16.msra.mxu1 %v1873_v19  ;;  %v113_v31 = vld [vmem:[#allocation5 + $0x120] sm:$0xff]  ;;  %v114_v33 = vld [vmem:[#allocation5 + $0x128] sm:$0xff] }
  0x55   :  { %901 = vmatprep.subr.bf16.mxu0 %v1880_v20  ;;  %944 = vmatprep.subr.bf16.mxu1 %v1882_v21  ;;  %v1896_v36 = vcombine.high %v109_v30, %v113_v31  ;;  %v1898_v37 = vcombine.high %v110_v32, %v114_v33  ;;  %v117_v38 = vld [vmem:[#allocation5 + $0x140] sm:$0xff]  ;;  %v118_v40 = vld [vmem:[#allocation5 + $0x148] sm:$0xff]  ;;  %v1895_v42 = vcombine.low %v109_v30, %v113_v31 }
  0x56   :  { %v121_v39 = vld [vmem:[#allocation5 + $0x160] sm:$0xff]  ;;  %v122_v41 = vld [vmem:[#allocation5 + $0x168] sm:$0xff]  ;;  %v1897_v43 = vcombine.low %v110_v32, %v114_v33 }
  0x57   :  { %v1904_v44 = vcombine.high %v117_v38, %v121_v39  ;;  %v1906_v45 = vcombine.high %v118_v40, %v122_v41  ;;  %v125_v46 = vld [vmem:[#allocation5 + $0x180] sm:$0xff]  ;;  %v126_v48 = vld [vmem:[#allocation5 + $0x188] sm:$0xff]  ;;  %v1903_v50 = vcombine.low %v117_v38, %v121_v39  ;;  %v1905_v51 = vcombine.low %v118_v40, %v122_v41 }
  0x58   :  { %902 = vmatpush1.bf16.msra.mxu0 %v1879_v26  ;;  %945 = vmatpush1.bf16.msra.mxu1 %v1881_v27  ;;  %v129_v47 = vld [vmem:[#allocation5 + $0x1a0] sm:$0xff]  ;;  %v130_v49 = vld [vmem:[#allocation5 + $0x1a8] sm:$0xff] }
  0x59   :  { %903 = vmatprep.subr.bf16.mxu0 %v1888_v28  ;;  %946 = vmatprep.subr.bf16.mxu1 %v1890_v29  ;;  %v1912_v52 = vcombine.high %v125_v46, %v129_v47  ;;  %v1914_v53 = vcombine.high %v126_v48, %v130_v49  ;;  %v133_v54 = vld [vmem:[#allocation5 + $0x1c0] sm:$0xff]  ;;  %v134_v57 = vld [vmem:[#allocation5 + $0x1c8] sm:$0xff]  ;;  %v1911_v59 = vcombine.low %v125_v46, %v129_v47 }
  0x5a   :  { %v137_v55 = vld [vmem:[#allocation5 + $0x1e0] sm:$0xff]  ;;  %v138_v58 = vld [vmem:[#allocation5 + $0x1e8] sm:$0xff]  ;;  %v1913_v60 = vcombine.low %v126_v48, %v130_v49 }
  0x5b   :  { %v1920_v61 = vcombine.high %v133_v54, %v137_v55  ;;  %v1922_v62 = vcombine.high %v134_v57, %v138_v58  ;;  %v141_v63 = vld [vmem:[#allocation5 + $0x200] sm:$0xff]  ;;  %v142_v1 = vld [vmem:[#allocation5 + $0x208] sm:$0xff]  ;;  %v1919_v3 = vcombine.low %v133_v54, %v137_v55  ;;  %v1921_v4 = vcombine.low %v134_v57, %v138_v58 }
  0x5c   :  { %904 = vmatpush1.bf16.msra.mxu0 %v1887_v34  ;;  %947 = vmatpush1.bf16.msra.mxu1 %v1889_v35  ;;  %v145_v0 = vld [vmem:[#allocation5 + $0x220] sm:$0xff]  ;;  %v146_v2 = vld [vmem:[#allocation5 + $0x228] sm:$0xff] }
  0x5d   :  { %905 = vmatprep.subr.bf16.mxu0 %v1896_v36  ;;  %948 = vmatprep.subr.bf16.mxu1 %v1898_v37  ;;  %v1928_v5 = vcombine.high %v141_v63, %v145_v0  ;;  %v1930_v6 = vcombine.high %v142_v1, %v146_v2  ;;  %v149_v7 = vld [vmem:[#allocation5 + $0x240] sm:$0xff]  ;;  %v150_v9 = vld [vmem:[#allocation5 + $0x248] sm:$0xff]  ;;  %v1927_v11 = vcombine.low %v141_v63, %v145_v0 }
  0x5e   :  { %v153_v8 = vld [vmem:[#allocation5 + $0x260] sm:$0xff]  ;;  %v154_v10 = vld [vmem:[#allocation5 + $0x268] sm:$0xff]  ;;  %v1929_v12 = vcombine.low %v142_v1, %v146_v2  ;;  %v80_v1 = vld [vmem:[#allocation5 + $0x18] sm:$0xff] }
  0x5f   :  { %v1936_v13 = vcombine.high %v149_v7, %v153_v8  ;;  %v1938_v14 = vcombine.high %v150_v9, %v154_v10  ;;  %v157_v15 = vld [vmem:[#allocation5 + $0x280] sm:$0xff]  ;;  %v158_v17 = vld [vmem:[#allocation5 + $0x288] sm:$0xff]  ;;  %v1935_v19 = vcombine.low %v149_v7, %v153_v8  ;;  %v1937_v20 = vcombine.low %v150_v9, %v154_v10  ;;  %v84_v2 = vld [vmem:[#allocation5 + $0x38] sm:$0xff] }
  0x60   :  { %906 = vmatpush1.bf16.msra.mxu0 %v1895_v42  ;;  %949 = vmatpush1.bf16.msra.mxu1 %v1897_v43  ;;  %v161_v16 = vld [vmem:[#allocation5 + $0x2a0] sm:$0xff]  ;;  %v162_v18 = vld [vmem:[#allocation5 + $0x2a8] sm:$0xff]  ;;  %v2475_v8 = vld [vmem:[#allocation2] ss:$8 sps:$4 sm:$0xff]  }
  0x61   :  { %907 = vmatprep.subr.bf16.mxu0 %v1904_v44  ;;  %950 = vmatprep.subr.bf16.mxu1 %v1906_v45  ;;  %v1944_v21 = vcombine.high %v157_v15, %v161_v16  ;;  %v1946_v22 = vcombine.high %v158_v17, %v162_v18  ;;  %v165_v23 = vld [vmem:[#allocation5 + $0x2c0] sm:$0xff]  ;;  %v166_v25 = vld [vmem:[#allocation5 + $0x2c8] sm:$0xff]  ;;  %v1943_v27 = vcombine.low %v157_v15, %v161_v16  ;;  %v88_v10 = vld [vmem:[#allocation5 + $0x58] sm:$0xff] }
  0x62   :  { %v169_v24 = vld [vmem:[#allocation5 + $0x2e0] sm:$0xff]  ;;  %v170_v26 = vld [vmem:[#allocation5 + $0x2e8] sm:$0xff]  ;;  %v1945_v28 = vcombine.low %v158_v17, %v162_v18  ;;  %v99_v15 = vld [vmem:[#allocation5 + $0xb0] sm:$0xff]  ;;  %v1869_v16 = vcombine.low %v80_v1, %v84_v2 }
  0x63   :  { %v1952_v29 = vcombine.high %v165_v23, %v169_v24  ;;  %v1954_v30 = vcombine.high %v166_v25, %v170_v26  ;;  %v173_v31 = vld [vmem:[#allocation5 + $0x300] sm:$0xff]  ;;  %v174_v33 = vld [vmem:[#allocation5 + $0x308] sm:$0xff]  ;;  %v1951_v35 = vcombine.low %v165_v23, %v169_v24  ;;  %v1953_v37 = vcombine.low %v166_v25, %v170_v26  ;;  %v96_v18 = vld [vmem:[#allocation5 + $0x98] sm:$0xff] }
  0x64   :  { %908 = vmatpush1.bf16.msra.mxu0 %v1903_v50  ;;  %951 = vmatpush1.bf16.msra.mxu1 %v1905_v51  ;;  %v177_v32 = vld [vmem:[#allocation5 + $0x320] sm:$0xff]  ;;  %v178_v34 = vld [vmem:[#allocation5 + $0x328] sm:$0xff]  ;;  %v107_v23 = vld [vmem:[#allocation5 + $0xf0] sm:$0xff] }
  0x65   :  { %909 = vmatprep.subr.bf16.mxu0 %v1912_v52  ;;  %952 = vmatprep.subr.bf16.mxu1 %v1914_v53  ;;  %v181_v36 = vld [vmem:[#allocation5 + $0x340] sm:$0xff]  ;;  %v1960_v38 = vcombine.high %v173_v31, %v177_v32  ;;  %v1962_v40 = vcombine.high %v174_v33, %v178_v34  ;;  %v182_v41 = vld [vmem:[#allocation5 + $0x348] sm:$0xff]  ;;  %v1959_v43 = vcombine.low %v173_v31, %v177_v32  ;;  %v104_v26 = vld [vmem:[#allocation5 + $0xd8] sm:$0xff] }
  0x66   :  { %v185_v39 = vld [vmem:[#allocation5 + $0x360] sm:$0xff]  ;;  %v186_v42 = vld [vmem:[#allocation5 + $0x368] sm:$0xff]  ;;  %v1961_v45 = vcombine.low %v174_v33, %v178_v34  ;;  %v115_v31 = vld [vmem:[#allocation5 + $0x130] sm:$0xff] }
  0x67   :  { %v189_v44 = vld [vmem:[#allocation5 + $0x380] sm:$0xff]  ;;  %v1968_v46 = vcombine.high %v181_v36, %v185_v39  ;;  %v1970_v48 = vcombine.high %v182_v41, %v186_v42  ;;  %v190_v49 = vld [vmem:[#allocation5 + $0x388] sm:$0xff]  ;;  %v1967_v51 = vcombine.low %v181_v36, %v185_v39  ;;  %v1969_v54 = vcombine.low %v182_v41, %v186_v42  ;;  %v112_v34 = vld [vmem:[#allocation5 + $0x118] sm:$0xff] }
  0x68   :  { %910 = vmatpush1.bf16.msra.mxu0 %v1911_v59  ;;  %953 = vmatpush1.bf16.msra.mxu1 %v1913_v60  ;;  %v193_v47 = vld [vmem:[#allocation5 + $0x3a0] sm:$0xff]  ;;  %v194_v50 = vld [vmem:[#allocation5 + $0x3a8] sm:$0xff]  ;;  %v123_v39 = vld [vmem:[#allocation5 + $0x170] sm:$0xff] }
  0x69   :  { %911 = vmatprep.subr.bf16.mxu0 %v1920_v61  ;;  %954 = vmatprep.subr.bf16.mxu1 %v1922_v62  ;;  %v197_v52 = vld [vmem:[#allocation5 + $0x3c0] sm:$0xff]  ;;  %v1976_v55 = vcombine.high %v189_v44, %v193_v47  ;;  %v198_v57 = vld [vmem:[#allocation5 + $0x3c8] sm:$0xff]  ;;  %v1978_v59 = vcombine.high %v190_v49, %v194_v50  ;;  %v1975_v60 = vcombine.low %v189_v44, %v193_v47  ;;  %v79_v61 = vld [vmem:[#allocation5 + $0x10] sm:$0xff] }
  0x6a   :  { %v201_v53 = vld [vmem:[#allocation5 + $0x3e0] sm:$0xff]  ;;  %v202_v58 = vld [vmem:[#allocation5 + $0x3e8] sm:$0xff]  ;;  %v83_v62 = vld [vmem:[#allocation5 + $0x30] sm:$0xff]  ;;  %v1977_v63 = vcombine.low %v190_v49, %v194_v50 }
  0x6b   :  { %v1984_v0 = vcombine.high %v197_v52, %v201_v53  ;;  %v1985_v7 = vcombine.low %v198_v57, %v202_v58  ;;  %v1868_v9 = vcombine.high %v79_v61, %v83_v62  ;;  %v120_v41 = vld [vmem:[#allocation5 + $0x158] sm:$0xff] }
  0x6c   :  { %912 = vmatpush1.bf16.msra.mxu0 %v1919_v3  ;;  %955 = vmatpush1.bf16.msra.mxu1 %v1921_v4  ;;  %v1986_v3 = vcombine.high %v198_v57, %v202_v58  ;;  %v1983_v4 = vcombine.low %v197_v52, %v201_v53  ;;  %v124_v42 = vld [vmem:[#allocation5 + $0x178] sm:$0xff]  ;;  %v135_v53 = vld [vmem:[#allocation5 + $0x1d0] sm:$0xff] }
  0x6d   :  { %913 = vmatprep.subr.bf16.mxu0 %v1928_v5  ;;  %956 = vmatprep.subr.bf16.mxu1 %v1930_v6  ;;  %v87_v5 = vld [vmem:[#allocation5 + $0x50] sm:$0xff]  ;;  %v128_v49 = vld [vmem:[#allocation5 + $0x198] sm:$0xff] }
  0x6e   :  { %v91_v6 = vld [vmem:[#allocation5 + $0x70] sm:$0xff]  ;;  %v132_v50 = vld [vmem:[#allocation5 + $0x1b8] sm:$0xff] }
  0x6f   :  { %v1876_v17 = vcombine.high %v87_v5, %v91_v6  ;;  %v136_v58 = vld [vmem:[#allocation5 + $0x1d8] sm:$0xff] }
  0x70   :  { %914 = vmatpush1.bf16.msra.mxu0 %v1927_v11  ;;  %957 = vmatpush1.bf16.msra.mxu1 %v1929_v12  ;;  %v92_v11 = vld [vmem:[#allocation5 + $0x78] sm:$0xff]  ;;  %v1870_v12 = vcombine.high %v80_v1, %v84_v2  ;;  %v143_v1 = vld [vmem:[#allocation5 + $0x210] sm:$0xff] }
  0x71   :  { %915 = vmatprep.subr.bf16.mxu0 %v1936_v13  ;;  %958 = vmatprep.subr.bf16.mxu1 %v1938_v14  ;;  %v1867_v13 = vcombine.low %v79_v61, %v83_v62  ;;  %v95_v14 = vld [vmem:[#allocation5 + $0x90] sm:$0xff]  ;;  %v1877_v24 = vcombine.low %v88_v10, %v92_v11  ;;  %v1917_v62 = vcombine.low %v128_v49, %v132_v50 }
  0x72   :  { %v1884_v25 = vcombine.high %v95_v14, %v99_v15  ;;  %v147_v2 = vld [vmem:[#allocation5 + $0x230] sm:$0xff] }
  0x74   :  { %916 = vmatpush1.bf16.msra.mxu0 %v1935_v19  ;;  %959 = vmatpush1.bf16.msra.mxu1 %v1937_v20  ;;  %v100_v19 = vld [vmem:[#allocation5 + $0xb8] sm:$0xff]  ;;  %v1878_v20 = vcombine.high %v88_v10, %v92_v11  ;;  %v151_v10 = vld [vmem:[#allocation5 + $0x250] sm:$0xff] }
  0x75   :  { %917 = vmatprep.subr.bf16.mxu0 %v1944_v21  ;;  %960 = vmatprep.subr.bf16.mxu1 %v1946_v22  ;;  %v1875_v21 = vcombine.low %v87_v5, %v91_v6  ;;  %v103_v22 = vld [vmem:[#allocation5 + $0xd0] sm:$0xff]  ;;  %v1885_v32 = vcombine.low %v96_v18, %v100_v19 }
  0x76   :  { %v1892_v33 = vcombine.high %v103_v22, %v107_v23  ;;  %v155_v11 = vld [vmem:[#allocation5 + $0x270] sm:$0xff] }
  0x78   :  { %918 = vmatpush1.bf16.msra.mxu0 %v1943_v27  ;;  %961 = vmatpush1.bf16.msra.mxu1 %v1945_v28  ;;  %v108_v27 = vld [vmem:[#allocation5 + $0xf8] sm:$0xff]  ;;  %v1886_v28 = vcombine.high %v96_v18, %v100_v19  ;;  %v159_v18 = vld [vmem:[#allocation5 + $0x290] sm:$0xff] }
  0x79   :  { %919 = vmatprep.subr.bf16.mxu0 %v1952_v29  ;;  %962 = vmatprep.subr.bf16.mxu1 %v1954_v30  ;;  %v1883_v29 = vcombine.low %v95_v14, %v99_v15  ;;  %v111_v30 = vld [vmem:[#allocation5 + $0x110] sm:$0xff]  ;;  %v1894_v36 = vcombine.high %v104_v26, %v108_v27  ;;  %v1931_v14 = vcombine.low %v143_v1, %v147_v2 }
  0x7a   :  { %v1899_v44 = vcombine.low %v111_v30, %v115_v31  ;;  %v163_v19 = vld [vmem:[#allocation5 + $0x2b0] sm:$0xff] }
  0x7c   :  { %920 = vmatpush1.bf16.msra.mxu0 %v1951_v35  ;;  %963 = vmatpush1.bf16.msra.mxu1 %v1953_v37  ;;  %v116_v35 = vld [vmem:[#allocation5 + $0x138] sm:$0xff]  ;;  %v1891_v37 = vcombine.low %v103_v22, %v107_v23  ;;  %v1939_v22 = vcombine.low %v151_v10, %v155_v11 }
  0x7d   :  { %921 = vmatprep.subr.bf16.mxu0 %v1960_v38  ;;  %964 = vmatprep.subr.bf16.mxu1 %v1962_v40  ;;  %v119_v38 = vld [vmem:[#allocation5 + $0x150] sm:$0xff]  ;;  %v1893_v40 = vcombine.low %v104_v26, %v108_v27  ;;  %v1901_v47 = vcombine.low %v112_v34, %v116_v35 }
  0x7e   :  { %v1907_v52 = vcombine.low %v119_v38, %v123_v39  ;;  %v167_v26 = vld [vmem:[#allocation5 + $0x2d0] sm:$0xff] }
  0x7f   :  { %v171_v27 = vld [vmem:[#allocation5 + $0x2f0] sm:$0xff] }
  0x80   :  { %922 = vmatpush1.bf16.msra.mxu0 %v1959_v43  ;;  %965 = vmatpush1.bf16.msra.mxu1 %v1961_v45  ;;  %v1902_v43 = vcombine.high %v112_v34, %v116_v35  ;;  %v127_v45 = vld [vmem:[#allocation5 + $0x190] sm:$0xff] }
  0x81   :  { %923 = vmatprep.subr.bf16.mxu0 %v1968_v46  ;;  %966 = vmatprep.subr.bf16.mxu1 %v1970_v48  ;;  %v131_v46 = vld [vmem:[#allocation5 + $0x1b0] sm:$0xff]  ;;  %v1908_v48 = vcombine.high %v119_v38, %v123_v39  ;;  %v1955_v38 = vcombine.low %v167_v26, %v171_v27 }
  0x82   :  { %v1916_v57 = vcombine.high %v127_v45, %v131_v46  ;;  %v1915_v61 = vcombine.low %v127_v45, %v131_v46  ;;  %v175_v34 = vld [vmem:[#allocation5 + $0x310] sm:$0xff] }
  0x83   :  { %v179_v35 = vld [vmem:[#allocation5 + $0x330] sm:$0xff] }
  0x84   :  { %924 = vmatpush1.bf16.msra.mxu0 %v1967_v51  ;;  %967 = vmatpush1.bf16.msra.mxu1 %v1969_v54  ;;  %v1910_v51 = vcombine.high %v120_v41, %v124_v42  ;;  %v139_v54 = vld [vmem:[#allocation5 + $0x1f0] sm:$0xff]  ;;  %v1963_v45 = vcombine.low %v175_v34, %v179_v35 }
  0x85   :  { %925 = vmatprep.subr.bf16.mxu0 %v1976_v55  ;;  %968 = vmatprep.subr.bf16.mxu1 %v1978_v59  ;;  %v1909_v55 = vcombine.low %v120_v41, %v124_v42  ;;  %v140_v59 = vld [vmem:[#allocation5 + $0x1f8] sm:$0xff]  ;;  %v1923_v5 = vcombine.low %v135_v53, %v139_v54  ;;  %v183_v41 = vld [vmem:[#allocation5 + $0x350] sm:$0xff] }
  0x86   :  { %v1925_v6 = vcombine.low %v136_v58, %v140_v59  ;;  %v187_v42 = vld [vmem:[#allocation5 + $0x370] sm:$0xff] }
  0x88   :  { %926 = vmatpush1.bf16.msra.mxu0 %v1975_v60  ;;  %969 = vmatpush1.bf16.msra.mxu1 %v1977_v63  ;;  %v1918_v60 = vcombine.high %v128_v49, %v132_v50  ;;  %v1924_v63 = vcombine.high %v135_v53, %v139_v54  ;;  %v191_v49 = vld [vmem:[#allocation5 + $0x390] sm:$0xff]  ;;  %v1971_v53 = vcombine.low %v183_v41, %v187_v42 }
  0x89   :  { %927 = vmatprep.subr.bf16.mxu0 %v1984_v0  ;;  %970 = vmatprep.subr.bf16.mxu1 %v1986_v3  ;;  %v1926_v0 = vcombine.high %v136_v58, %v140_v59  ;;  %v144_v3 = vld [vmem:[#allocation5 + $0x218] sm:$0xff]  ;;  %v195_v50 = vld [vmem:[#allocation5 + $0x3b0] sm:$0xff] }
  0x8a   :  { %v199_v58 = vld [vmem:[#allocation5 + $0x3d0] sm:$0xff] }
  0x8b   :  { %v203_v59 = vld [vmem:[#allocation5 + $0x3f0] sm:$0xff] }
  0x8c   :  { %928 = vmatpush1.bf16.msra.mxu0 %v1983_v4  ;;  %971 = vmatpush1.bf16.msra.mxu1 %v1985_v7  ;;  %v148_v4 = vld [vmem:[#allocation5 + $0x238] sm:$0xff]  ;;  %v1932_v7 = vcombine.high %v143_v1, %v147_v2  ;;  %v1987_v2 = vcombine.low %v199_v58, %v203_v59 }
  0x8d   :  { %983 = vmatprep.subr.bf16.mxu0 %v1868_v9  ;;  %1026 = vmatprep.subr.bf16.mxu1 %v1870_v12  ;;  %v1934_v9 = vcombine.high %v144_v3, %v148_v4  ;;  %v152_v12 = vld [vmem:[#allocation5 + $0x258] sm:$0xff]  ;;  %v1933_v15 = vcombine.low %v144_v3, %v148_v4  ;;  %v2158_v4 = vld [vmem:[#allocation8 + $0x40] sm:$0xff]  }
  0x8f   :  { %930 = vmatmul.mubr.bf16.vlgmr.msra.gmra.mrb[0].mxu0 %v2475_v8  ;;  %973 = vmatmul.mubr.bf16.vlgmr.msra.gmra.mrb[0].mxu1 %v2475_v8 }
  0x90   :  { %984 = vmatpush1.bf16.msra.mxu0 %v1867_v13  ;;  %1027 = vmatpush1.bf16.msra.mxu1 %v1869_v16  ;;  %v156_v13 = vld [vmem:[#allocation5 + $0x278] sm:$0xff]  ;;  %v1940_v16 = vcombine.high %v151_v10, %v155_v11  ;;  %v2163_v10 = vld [vmem:[#allocation8 + $0xc8] sm:$0xff]  }
  0x91   :  { %985 = vmatprep.subr.bf16.mxu0 %v1876_v17  ;;  %1028 = vmatprep.subr.bf16.mxu1 %v1878_v20  ;;  %v1942_v17 = vcombine.high %v152_v12, %v156_v13  ;;  %v160_v20 = vld [vmem:[#allocation5 + $0x298] sm:$0xff]  ;;  %v1941_v23 = vcombine.low %v152_v12, %v156_v13  ;;  %v2164_v11 = vld [vmem:[#allocation8 + $0x8] sm:$0xff]  }
  0x92   :  { %1015 = vmatprep.mubr.bf16.mxu0 %v2471_v56  ;;  %1058 = vmatprep.mubr.bf16.mxu1 %v2471_v56  ;;  %v1900_v56 = vcombine.high %v111_v30, %v115_v31  ;;  %v1947_v30 = vcombine.low %v159_v18, %v163_v19  ;;  %v2165_v12 = vld [vmem:[#allocation8 + $0x88] sm:$0xff]   ;;  %v2166_v13 = vld [vmem:[#allocation8 + $0x50] sm:$0xff]  }
  0x94   :  { %986 = vmatpush1.bf16.msra.mxu0 %v1875_v21  ;;  %1029 = vmatpush1.bf16.msra.mxu1 %v1877_v24  ;;  %v164_v21 = vld [vmem:[#allocation5 + $0x2b8] sm:$0xff]  ;;  %v1948_v24 = vcombine.high %v159_v18, %v163_v19  ;;  %v2171_v18 = vld [vmem:[#allocation8 + $0xd8] sm:$0xff]  }
  0x95   :  { %987 = vmatprep.subr.bf16.mxu0 %v1884_v25  ;;  %1030 = vmatprep.subr.bf16.mxu1 %v1886_v28  ;;  %v1950_v25 = vcombine.high %v160_v20, %v164_v21  ;;  %v168_v28 = vld [vmem:[#allocation5 + $0x2d8] sm:$0xff]  ;;  %v1949_v31 = vcombine.low %v160_v20, %v164_v21  ;;  %v2172_v19 = vld [vmem:[#allocation8 + $0x18] sm:$0xff]   ;;  %v2174_v20 = vld [vmem:[#allocation8 + $0x60] sm:$0xff]  }
  0x96   :  { %v2175_v21 = vld [vmem:[#allocation8 + $0xe0] sm:$0xff]  }
  0x98   :  { %988 = vmatpush1.bf16.msra.mxu0 %v1883_v29  ;;  %1031 = vmatpush1.bf16.msra.mxu1 %v1885_v32  ;;  %v172_v29 = vld [vmem:[#allocation5 + $0x2f8] sm:$0xff]  ;;  %v1956_v32 = vcombine.high %v167_v26, %v171_v27  ;;  %v2180_v26 = vld [vmem:[#allocation8 + $0x28] sm:$0xff]  }
  0x99   :  { %989 = vmatprep.subr.bf16.mxu0 %v1892_v33  ;;  %1032 = vmatprep.subr.bf16.mxu1 %v1894_v36  ;;  %v1958_v33 = vcombine.high %v168_v28, %v172_v29  ;;  %v176_v36 = vld [vmem:[#allocation5 + $0x318] sm:$0xff]  ;;  %v1957_v39 = vcombine.low %v168_v28, %v172_v29  ;;  %v2181_v27 = vld [vmem:[#allocation8 + $0xa8] sm:$0xff]  }
  0x9a   :  { %v2182_v28 = vld [vmem:[#allocation8 + $0x70] sm:$0xff]  }
  0x9b   :  { %v2183_v29 = vld [vmem:[#allocation8 + $0xf0] sm:$0xff]  }
  0x9c   :  { %990 = vmatpush1.bf16.msra.mxu0 %v1891_v37  ;;  %1033 = vmatpush1.bf16.msra.mxu1 %v1893_v40  ;;  %v180_v37 = vld [vmem:[#allocation5 + $0x338] sm:$0xff]  ;;  %v1964_v40 = vcombine.high %v175_v34, %v179_v35  ;;  %v2188_v34 = vld [vmem:[#allocation8 + $0x38] sm:$0xff]  }
  0x9d   :  { %991 = vmatprep.subr.bf16.mxu0 %v1900_v56  ;;  %1034 = vmatprep.subr.bf16.mxu1 %v1902_v43  ;;  %v1966_v56 = vcombine.high %v176_v36, %v180_v37  ;;  %v184_v43 = vld [vmem:[#allocation5 + $0x358] sm:$0xff]  ;;  %v1965_v46 = vcombine.low %v176_v36, %v180_v37  ;;  %v2189_v35 = vld [vmem:[#allocation8 + $0xb8] sm:$0xff]   ;;  %v2190_v36 = vld [vmem:[#allocation8 + $0x140] sm:$0xff]  }
  0x9e   :  { %v2191_v37 = vld [vmem:[#allocation8 + $0x1c0] sm:$0xff]  }
  0xa0   :  { %992 = vmatpush1.bf16.msra.mxu0 %v1899_v44  ;;  %1035 = vmatpush1.bf16.msra.mxu1 %v1901_v47  ;;  %v188_v44 = vld [vmem:[#allocation5 + $0x378] sm:$0xff]  ;;  %v1972_v47 = vcombine.high %v183_v41, %v187_v42 }
  0xa1   :  { %993 = vmatprep.subr.bf16.mxu0 %v1908_v48  ;;  %1036 = vmatprep.subr.bf16.mxu1 %v1910_v51  ;;  %v1974_v48 = vcombine.high %v184_v43, %v188_v44  ;;  %v192_v51 = vld [vmem:[#allocation5 + $0x398] sm:$0xff]  ;;  %v1973_v54 = vcombine.low %v184_v43, %v188_v44 }
  0xa4   :  { %994 = vmatpush1.bf16.msra.mxu0 %v1907_v52  ;;  %1037 = vmatpush1.bf16.msra.mxu1 %v1909_v55  ;;  %v196_v52 = vld [vmem:[#allocation5 + $0x3b8] sm:$0xff]  ;;  %v1980_v55 = vcombine.high %v191_v49, %v195_v50 }
  0xa5   :  { %995 = vmatprep.subr.bf16.mxu0 %v1916_v57  ;;  %1038 = vmatprep.subr.bf16.mxu1 %v1918_v60  ;;  %v1982_v57 = vcombine.high %v192_v51, %v196_v52  ;;  %v200_v60 = vld [vmem:[#allocation5 + $0x3d8] sm:$0xff] }
  0xa8   :  { %996 = vmatpush1.bf16.msra.mxu0 %v1915_v61  ;;  %1039 = vmatpush1.bf16.msra.mxu1 %v1917_v62  ;;  %v204_v61 = vld [vmem:[#allocation5 + $0x3f8] sm:$0xff]  ;;  %v1979_v62 = vcombine.low %v191_v49, %v195_v50 }
  0xa9   :  { %997 = vmatprep.subr.bf16.mxu0 %v1924_v63  ;;  %1040 = vmatprep.subr.bf16.mxu1 %v1926_v0  ;;  %v1981_v63 = vcombine.low %v192_v51, %v196_v52  ;;  %v1988_v0 = vcombine.high %v199_v58, %v203_v59  ;;  %v1990_v1 = vcombine.high %v200_v60, %v204_v61 }
  0xaa   :  { %v1989_v3 = vcombine.low %v200_v60, %v204_v61 }
  0xac   :  { %998 = vmatpush1.bf16.msra.mxu0 %v1923_v5  ;;  %1041 = vmatpush1.bf16.msra.mxu1 %v1925_v6  ;;  %v2159_v5 = vld [vmem:[#allocation8 + $0xc0] sm:$0xff]  }
  0xad   :  { %999 = vmatprep.subr.bf16.mxu0 %v1932_v7  ;;  %1042 = vmatprep.subr.bf16.mxu1 %v1934_v9  ;;  %v2160_v6 = vld [vmem:[#allocation8] sm:$0xff]   ;;  %v2162_v9 = vld [vmem:[#allocation8 + $0x48] sm:$0xff]  }
  0xae   :  { %v2161_v7 = vld [vmem:[#allocation8 + $0x80] sm:$0xff]  }
  0xb0   :  { %1000 = vmatpush1.bf16.msra.mxu0 %v1931_v14  ;;  %1043 = vmatpush1.bf16.msra.mxu1 %v1933_v15  ;;  %v2167_v14 = vld [vmem:[#allocation8 + $0xd0] sm:$0xff]  }
  0xb1   :  { %1001 = vmatprep.subr.bf16.mxu0 %v1940_v16  ;;  %1044 = vmatprep.subr.bf16.mxu1 %v1942_v17  ;;  %v2168_v15 = vld [vmem:[#allocation8 + $0x10] sm:$0xff]   ;;  %v2170_v17 = vld [vmem:[#allocation8 + $0x58] sm:$0xff]  }
  0xb2   :  { %v2169_v16 = vld [vmem:[#allocation8 + $0x90] sm:$0xff]  }
  0xb4   :  { %1002 = vmatpush1.bf16.msra.mxu0 %v1939_v22  ;;  %1045 = vmatpush1.bf16.msra.mxu1 %v1941_v23  ;;  %v2176_v22 = vld [vmem:[#allocation8 + $0x20] sm:$0xff]  }
  0xb5   :  { %1003 = vmatprep.subr.bf16.mxu0 %v1948_v24  ;;  %1046 = vmatprep.subr.bf16.mxu1 %v1950_v25  ;;  %v2177_v23 = vld [vmem:[#allocation8 + $0xa0] sm:$0xff]   ;;  %v2178_v24 = vld [vmem:[#allocation8 + $0x68] sm:$0xff]  }
  0xb6   :  { %v2179_v25 = vld [vmem:[#allocation8 + $0xe8] sm:$0xff]  }
  0xb8   :  { %1004 = vmatpush1.bf16.msra.mxu0 %v1947_v30  ;;  %1047 = vmatpush1.bf16.msra.mxu1 %v1949_v31  ;;  %v2184_v30 = vld [vmem:[#allocation8 + $0x30] sm:$0xff]  }
  0xb9   :  { %1005 = vmatprep.subr.bf16.mxu0 %v1956_v32  ;;  %1048 = vmatprep.subr.bf16.mxu1 %v1958_v33  ;;  %v2185_v31 = vld [vmem:[#allocation8 + $0xb0] sm:$0xff]   ;;  %v2186_v32 = vld [vmem:[#allocation8 + $0x78] sm:$0xff]  }
  0xba   :  { %v2187_v33 = vld [vmem:[#allocation8 + $0xf8] sm:$0xff]  }
  0xbc   :  { %1006 = vmatpush1.bf16.msra.mxu0 %v1955_v38  ;;  %1049 = vmatpush1.bf16.msra.mxu1 %v1957_v39  ;;  %v207_v38 = vlaneseq }
  0xbd   :  { %1007 = vmatprep.subr.bf16.mxu0 %v1964_v40  ;;  %1050 = vmatprep.subr.bf16.mxu1 %v1966_v56  ;;  %v2486_v56 = vld [vmem:[#allocation7] sm:$0xff] }
  0xbe   :  { %v2483_v39 = vshrl.u32 %v207_v38, 7 }
  0xc0   :  { %1008 = vmatpush1.bf16.msra.mxu0 %v1963_v45  ;;  %1051 = vmatpush1.bf16.msra.mxu1 %v1965_v46  ;;  %v209_v40 = vsub.s32 0, %v2483_v39  ;;  %v217_v41 = vsub.s32 2, %v2483_v39  ;;  %v213_v42 = vsub.s32 1, %v2483_v39  ;;  %v221_v43 = vsub.s32 3, %v2483_v39 }
  0xc1   :  { %1009 = vmatprep.subr.bf16.mxu0 %v1972_v47  ;;  %1052 = vmatprep.subr.bf16.mxu1 %v1974_v48 }
  0xc2   :  { %v210_v44 = vrot.slane %v2486_v56, %v209_v40  ;;  %v218_v45 = vrot.slane %v2486_v56, %v217_v41  ;;  %v214_v46 = vrot.slane %v2486_v56, %v213_v42  ;;  %v222_v47 = vrot.slane %v2486_v56, %v221_v43 }
  0xc4   :  { %1010 = vmatpush1.bf16.msra.mxu0 %v1971_v53  ;;  %1053 = vmatpush1.bf16.msra.mxu1 %v1973_v54 }
  0xc5   :  { %1011 = vmatprep.subr.bf16.mxu0 %v1980_v55  ;;  %1054 = vmatprep.subr.bf16.mxu1 %v1982_v57 }
  0xc8   :  { %1012 = vmatpush1.bf16.msra.mxu0 %v1979_v62  ;;  %1055 = vmatpush1.bf16.msra.mxu1 %v1981_v63 }
  0xc9   :  { %1013 = vmatprep.subr.bf16.mxu0 %v1988_v0  ;;  %1056 = vmatprep.subr.bf16.mxu1 %v1990_v1 }
  0xcc   :  { %1014 = vmatpush1.bf16.msra.mxu0 %v1987_v2  ;;  %1057 = vmatpush1.bf16.msra.mxu1 %v1989_v3 }
  0xcd   :  { %2056 = vmatprep.subr.bf16.mxu0 %v2158_v4  ;;  %2078 = vmatprep.subr.bf16.mxu1 %v2159_v5 }
  0xcf   :  { %1016 = vmatmul.mubr.bf16.vlgmr.msra.gmra.mrb[4].mxu0 %v2475_v8  ;;  %1059 = vmatmul.mubr.bf16.vlgmr.msra.gmra.mrb[4].mxu1 %v2475_v8  ;;  %v2173_v8 = vld [vmem:[#allocation8 + $0x98] sm:$0xff]  }
  0xd0   :  { %2057 = vmatpush3.bf16.msra.mxu0 %v2160_v6  ;;  %2079 = vmatpush3.bf16.msra.mxu1 %v2161_v7 }
  0xd1   :  { %2058 = vmatprep.subr.bf16.mxu0 %v2162_v9  ;;  %2080 = vmatprep.subr.bf16.mxu1 %v2163_v10 }
  0xd4   :  { %2059 = vmatpush3.bf16.msra.mxu0 %v2164_v11  ;;  %2081 = vmatpush3.bf16.msra.mxu1 %v2165_v12 }
  0xd5   :  { %2060 = vmatprep.subr.bf16.mxu0 %v2166_v13  ;;  %2082 = vmatprep.subr.bf16.mxu1 %v2167_v14 }
  0xd8   :  { %2061 = vmatpush3.bf16.msra.mxu0 %v2168_v15  ;;  %2083 = vmatpush3.bf16.msra.mxu1 %v2169_v16 }
  0xd9   :  { %2062 = vmatprep.subr.bf16.mxu0 %v2170_v17  ;;  %2084 = vmatprep.subr.bf16.mxu1 %v2171_v18 }
  0xdc   :  { %2063 = vmatpush3.bf16.msra.mxu0 %v2172_v19  ;;  %2085 = vmatpush3.bf16.msra.mxu1 %v2173_v8 }
  0xdd   :  { %2064 = vmatprep.subr.bf16.mxu0 %v2174_v20  ;;  %2086 = vmatprep.subr.bf16.mxu1 %v2175_v21 }
  0xe0   :  { %2065 = vmatpush3.bf16.msra.mxu0 %v2176_v22  ;;  %2087 = vmatpush3.bf16.msra.mxu1 %v2177_v23 }
  0xe1   :  { %2066 = vmatprep.subr.bf16.mxu0 %v2178_v24  ;;  %2088 = vmatprep.subr.bf16.mxu1 %v2179_v25 }
  0xe4   :  { %2067 = vmatpush3.bf16.msra.mxu0 %v2180_v26  ;;  %2089 = vmatpush3.bf16.msra.mxu1 %v2181_v27 }
  0xe5   :  { %2068 = vmatprep.subr.bf16.mxu0 %v2182_v28  ;;  %2090 = vmatprep.subr.bf16.mxu1 %v2183_v29 }
  0xe8   :  { %2069 = vmatpush3.bf16.msra.mxu0 %v2184_v30  ;;  %2091 = vmatpush3.bf16.msra.mxu1 %v2185_v31 }
  0xe9   :  { %2070 = vmatprep.subr.bf16.mxu0 %v2186_v32  ;;  %2092 = vmatprep.subr.bf16.mxu1 %v2187_v33 }
  0xec   :  { %2071 = vmatpush3.bf16.msra.mxu0 %v2188_v34  ;;  %2093 = vmatpush3.bf16.msra.mxu1 %v2189_v35 }
  0xed   :  { %2100 = vmatprep.subr.bf16.mxu0 %v2190_v36  ;;  %2122 = vmatprep.subr.bf16.mxu1 %v2191_v37 }
 0x162   :  { %v931_v48 = vpop.f32.mrb[0].mxu0  ;;  %v974_v50 = vpop.f32.mrb[0].mxu1 }
 0x163   :  { %v932_v49 = vadd.f32 %v931_v48, %v210_v44  ;;  %v933_v51 = vpop.f32.mrb[1].mxu0  ;;  %v975_v52 = vadd.f32 %v974_v50, %v218_v45  ;;  %v976_v54 = vpop.f32.mrb[1].mxu1  ;;  %v2194_v48 = vld [vmem:[#allocation8 + $0x148] sm:$0xff]  }
 0x164   :  { %v934_v53 = vadd.f32 %v933_v51, %v214_v46  ;;  %v935_v55 = vpop.f32.mrb[2].mxu0  ;;  %v977_v58 = vadd.f32 %v976_v54, %v222_v47  ;;  %v978_v60 = vpop.f32.mrb[2].mxu1  ;;  %v2196_v50 = vld [vmem:[#allocation8 + $0x108] sm:$0xff]   ;;  %v2200_v54 = vld [vmem:[#allocation8 + $0x110] sm:$0xff]  }
 0x165   :  { %v1085_v57 = vmul.f32 0.70710677, %v932_v49  ;;  %v936_v59 = vadd.f32 %v935_v55, %v210_v44  ;;  %v937_v61 = vpop.f32.mrb[3].mxu0  ;;  %v1087_v62 = vmul.f32 0.70710677, %v975_v52  ;;  %v980_v1 = vpop.f32.mrb[3].mxu1  ;;  %v979_v3 = vadd.f32 %v978_v60, %v218_v45 }
 0x166   :  { %v1086_v63 = vmul.f32 0.70710677, %v934_v53  ;;  %v1088_v0 = vmul.f32 0.70710677, %v977_v58  ;;  %v938_v4 = vadd.f32 %v937_v61, %v214_v46  ;;  %v981_v5 = vadd.f32 %v980_v1, %v222_v47  ;;  %v2192_v45 = vld [vmem:[#allocation8 + $0x100] sm:$0xff]   ;;  %v2197_v51 = vld [vmem:[#allocation8 + $0x188] sm:$0xff]  }
 0x167   :  { %2222 = verf.f32 %v1085_v57  ;;  %v1093_v2 = vmul.f32 0.70710677, %v936_v59  ;;  %v1095_v6 = vmul.f32 0.70710677, %v979_v3  ;;  %v1069_v16 = vmul.f32 0.5, %v932_v49  ;;  %v2193_v47 = vld [vmem:[#allocation8 + $0x180] sm:$0xff]  }
 0x168   :  { %2224 = verf.f32 %v1087_v62  ;;  %v1094_v7 = vmul.f32 0.70710677, %v938_v4  ;;  %v1096_v9 = vmul.f32 0.70710677, %v981_v5  ;;  %v1071_v17 = vmul.f32 0.5, %v975_v52  ;;  %v2195_v49 = vld [vmem:[#allocation8 + $0x1c8] sm:$0xff]  }
 0x169   :  { %2226 = verf.f32 %v1086_v63  ;;  %v1070_v8 = vmul.f32 0.5, %v934_v53  ;;  %v1077_v21 = vmul.f32 0.5, %v936_v59  ;;  %v1072_v24 = vmul.f32 0.5, %v977_v58  ;;  %v2198_v52 = vld [vmem:[#allocation8 + $0x150] sm:$0xff]   ;;  %v2202_v57 = vld [vmem:[#allocation8 + $0x158] sm:$0xff]   ;;  %v2206_v61 = vld [vmem:[#allocation8 + $0x160] sm:$0xff]  }
 0x16a   :  { %2228 = verf.f32 %v1088_v0  ;;  %v1079_v26 = vmul.f32 0.5, %v979_v3  ;;  %v1078_v31 = vmul.f32 0.5, %v938_v4  ;;  %v1080_v35 = vmul.f32 0.5, %v981_v5  ;;  %v2199_v53 = vld [vmem:[#allocation8 + $0x1d0] sm:$0xff]   ;;  %v2203_v58 = vld [vmem:[#allocation8 + $0x1d8] sm:$0xff]   ;;  %v2207_v62 = vld [vmem:[#allocation8 + $0x1e0] sm:$0xff]  }
 0x16b   :  { %2230 = verf.f32 %v1093_v2  ;;  %v2201_v55 = vld [vmem:[#allocation8 + $0x190] sm:$0xff]   ;;  %v2204_v59 = vld [vmem:[#allocation8 + $0x118] sm:$0xff]   ;;  %v2208_v63 = vld [vmem:[#allocation8 + $0x120] sm:$0xff]  }
 0x16c   :  { %2232 = verf.f32 %v1095_v6  ;;  %v2205_v60 = vld [vmem:[#allocation8 + $0x198] sm:$0xff]   ;;  %v2209_v0 = vld [vmem:[#allocation8 + $0x1a0] sm:$0xff]   ;;  %v2210_v1 = vld [vmem:[#allocation8 + $0x168] sm:$0xff]  }
 0x16d   :  { %2234 = verf.f32 %v1094_v7  ;;  %v2211_v2 = vld [vmem:[#allocation8 + $0x1e8] sm:$0xff]   ;;  %v2214_v5 = vld [vmem:[#allocation8 + $0x170] sm:$0xff]  }
 0x16e   :  { %2236 = verf.f32 %v1096_v9  ;;  %v2212_v3 = vld [vmem:[#allocation8 + $0x128] sm:$0xff]   ;;  %v2215_v6 = vld [vmem:[#allocation8 + $0x1f0] sm:$0xff]  }
 0x16f   :  { %v2213_v4 = vld [vmem:[#allocation8 + $0x1a8] sm:$0xff]   ;;  %v2216_v7 = vld [vmem:[#allocation8 + $0x130] sm:$0xff]  }
 0x170   :  { %v2217_v9 = vld [vmem:[#allocation8 + $0x1b0] sm:$0xff]  }
 0x171   :  { %v2223_v10 = vpop.eup %2222 }
 0x172   :  { %v2225_v11 = vpop.eup %2224  ;;  %v1117_v14 = vadd.f32 1.0, %v2223_v10  ;;  %v2218_v10 = vld [vmem:[#allocation8 + $0x178] sm:$0xff]  }
 0x173   :  { %v2227_v12 = vpop.eup %2226  ;;  %v1119_v18 = vadd.f32 1.0, %v2225_v11  ;;  %v2219_v11 = vld [vmem:[#allocation8 + $0x1f8] sm:$0xff]  }
 0x174   :  { %v2229_v13 = vpop.eup %2228  ;;  %v1118_v20 = vadd.f32 1.0, %v2227_v12  ;;  %v1133_v29 = vmul.f32 %v1117_v14, %v1069_v16  ;;  %v2220_v12 = vld [vmem:[#allocation8 + $0x138] sm:$0xff]   ;;  %v225_v14 = vsub.s32 4, %v2483_v39  ;;  %v229_v16 = vsub.s32 5, %v2483_v39 }
 0x175   :  { %v2231_v15 = vpop.eup %2230  ;;  %v1120_v25 = vadd.f32 1.0, %v2229_v13  ;;  %v1135_v33 = vmul.f32 %v1119_v18, %v1071_v17  ;;  %v2221_v13 = vld [vmem:[#allocation8 + $0x1b8] sm:$0xff]   ;;  %v237_v17 = vsub.s32 7, %v2483_v39 }
 0x176   :  { %v2233_v19 = vpop.eup %2232  ;;  %v1125_v22 = vadd.f32 1.0, %v2231_v15  ;;  %v1134_v37 = vmul.f32 %v1118_v20, %v1070_v8  ;;  %v233_v15 = vsub.s32 6, %v2483_v39  ;;  %v226_v18 = vrot.slane %v2486_v56, %v225_v14 }
 0x177   :  { %v2235_v23 = vpop.eup %2234  ;;  %v1127_v27 = vadd.f32 1.0, %v2233_v19  ;;  %v1136_v41 = vmul.f32 %v1120_v25, %v1072_v24  ;;  %v230_v8 = vrot.slane %v2486_v56, %v229_v16  ;;  %v238_v20 = vrot.slane %v2486_v56, %v237_v17 }
 0x178   :  { %v2237_v28 = vpop.eup %2236  ;;  %v1141_v30 = vmul.f32 %v1125_v22, %v1077_v21  ;;  %v1126_v32 = vadd.f32 1.0, %v2235_v23  ;;  %v234_v19 = vrot.slane %v2486_v56, %v233_v15 }
 0x179   :  { %v1143_v34 = vmul.f32 %v1127_v27, %v1079_v26  ;;  %v1128_v36 = vadd.f32 1.0, %v2237_v28 }
 0x17a   :  { %v1149_v38 = vpack.c.bf16 %v1141_v30, %v1133_v29  ;;  %v1142_v40 = vmul.f32 %v1126_v32, %v1078_v31 }
 0x17b   :  { %v1151_v42 = vpack.c.bf16 %v1143_v34, %v1135_v33  ;;  %v1144_v43 = vmul.f32 %v1128_v36, %v1080_v35 }
 0x17c   :  { %v1150_v44 = vpack.c.bf16 %v1142_v40, %v1134_v37 }
 0x17d   :  { %v1152_v46 = vpack.c.bf16 %v1144_v43, %v1136_v41 }
 0x17e   :  { %1708 = vmatprep.mubr.bf16.mxu0 %v1150_v44 }
 0x17f   :  { %1749 = vmatprep.mubr.bf16.mxu1 %v1152_v46  ;;  %1709 = vmatmul.mubr.bf16.vlgmr.msra.gmra.mrb[8].mxu0 %v1149_v38 }
 0x180   :  { %1750 = vmatmul.mubr.bf16.vlgmr.msra.gmra.mrb[8].mxu1 %v1151_v42  ;;  %2101 = vmatpush3.bf16.msra.mxu0 %v2192_v45 }
 0x181   :  { %2123 = vmatpush3.bf16.msra.mxu1 %v2193_v47  ;;  %2102 = vmatprep.subr.bf16.mxu0 %v2194_v48 }
 0x182   :  { %2124 = vmatprep.subr.bf16.mxu1 %v2195_v49 }
 0x184   :  { %2103 = vmatpush3.bf16.msra.mxu0 %v2196_v50 }
 0x185   :  { %2125 = vmatpush3.bf16.msra.mxu1 %v2197_v51  ;;  %2104 = vmatprep.subr.bf16.mxu0 %v2198_v52 }
 0x186   :  { %2126 = vmatprep.subr.bf16.mxu1 %v2199_v53 }
 0x188   :  { %2105 = vmatpush3.bf16.msra.mxu0 %v2200_v54 }
 0x189   :  { %2127 = vmatpush3.bf16.msra.mxu1 %v2201_v55  ;;  %2106 = vmatprep.subr.bf16.mxu0 %v2202_v57 }
 0x18a   :  { %2128 = vmatprep.subr.bf16.mxu1 %v2203_v58 }
 0x18c   :  { %2107 = vmatpush3.bf16.msra.mxu0 %v2204_v59 }
 0x18d   :  { %2129 = vmatpush3.bf16.msra.mxu1 %v2205_v60  ;;  %2108 = vmatprep.subr.bf16.mxu0 %v2206_v61 }
 0x18e   :  { %2130 = vmatprep.subr.bf16.mxu1 %v2207_v62 }
 0x190   :  { %2109 = vmatpush3.bf16.msra.mxu0 %v2208_v63 }
 0x191   :  { %2131 = vmatpush3.bf16.msra.mxu1 %v2209_v0  ;;  %2110 = vmatprep.subr.bf16.mxu0 %v2210_v1 }
 0x192   :  { %2132 = vmatprep.subr.bf16.mxu1 %v2211_v2 }
 0x194   :  { %2111 = vmatpush3.bf16.msra.mxu0 %v2212_v3 }
 0x195   :  { %2133 = vmatpush3.bf16.msra.mxu1 %v2213_v4  ;;  %2112 = vmatprep.subr.bf16.mxu0 %v2214_v5 }
 0x196   :  { %2134 = vmatprep.subr.bf16.mxu1 %v2215_v6 }
 0x198   :  { %2113 = vmatpush3.bf16.msra.mxu0 %v2216_v7 }
 0x199   :  { %2135 = vmatpush3.bf16.msra.mxu1 %v2217_v9  ;;  %2114 = vmatprep.subr.bf16.mxu0 %v2218_v10 }
 0x19a   :  { %2136 = vmatprep.subr.bf16.mxu1 %v2219_v11 }
 0x19c   :  { %2115 = vmatpush3.bf16.msra.mxu0 %v2220_v12 }
 0x19d   :  { %2137 = vmatpush3.bf16.msra.mxu1 %v2221_v13 }
 0x1a2   :  { %v1017_v21 = vpop.f32.mrb[4].mxu0  ;;  %v1060_v23 = vpop.f32.mrb[4].mxu1 }
 0x1a3   :  { %v1018_v22 = vadd.f32 %v1017_v21, %v226_v18  ;;  %v1019_v24 = vpop.f32.mrb[5].mxu0  ;;  %v1061_v25 = vadd.f32 %v1060_v23, %v234_v19  ;;  %v1062_v27 = vpop.f32.mrb[5].mxu1 }
 0x1a4   :  { %v1020_v26 = vadd.f32 %v1019_v24, %v230_v8  ;;  %v1021_v28 = vpop.f32.mrb[6].mxu0  ;;  %v1063_v30 = vadd.f32 %v1062_v27, %v238_v20  ;;  %v1064_v31 = vpop.f32.mrb[6].mxu1 }
 0x1a5   :  { %v1089_v29 = vmul.f32 0.70710677, %v1018_v22  ;;  %v1022_v39 = vadd.f32 %v1021_v28, %v226_v18  ;;  %v1023_v32 = vpop.f32.mrb[7].mxu0  ;;  %v1091_v33 = vmul.f32 0.70710677, %v1061_v25  ;;  %v1066_v36 = vpop.f32.mrb[7].mxu1  ;;  %v1065_v37 = vadd.f32 %v1064_v31, %v234_v19 }
 0x1a6   :  { %v1090_v34 = vmul.f32 0.70710677, %v1020_v26  ;;  %v1092_v35 = vmul.f32 0.70710677, %v1063_v30  ;;  %v1024_v38 = vadd.f32 %v1023_v32, %v230_v8  ;;  %v1067_v40 = vadd.f32 %v1066_v36, %v238_v20  ;;  %v1991_v8 = vld [vmem:[%s2525_s4] ss:$0 sm:$0xff] }
 0x1a7   :  { %2238 = verf.f32 %v1089_v29  ;;  %v1097_v56 = vmul.f32 0.70710677, %v1022_v39  ;;  %v1099_v41 = vmul.f32 0.70710677, %v1065_v37  ;;  %v1073_v50 = vmul.f32 0.5, %v1018_v22  ;;  %s2382_s4 = smov [#allocation10]  }
 0x1a8   :  { %2240 = verf.f32 %v1091_v33  ;;  %v1098_v42 = vmul.f32 0.70710677, %v1024_v38  ;;  %v1100_v43 = vmul.f32 0.70710677, %v1067_v40  ;;  %v1075_v51 = vmul.f32 0.5, %v1061_v25  ;;  %s1847_s21 = sshll.u32 %s2382_s4, 4  ;;  %s1848_s21 = int_to_ptr.vmem [resolvable:$true] %s1847_s21 }
 0x1a9   :  { %2242 = verf.f32 %v1090_v34  ;;  %v1074_v54 = vmul.f32 0.5, %v1020_v26  ;;  %v1081_v57 = vmul.f32 0.5, %v1022_v39  ;;  %v1076_v60 = vmul.f32 0.5, %v1063_v30  ;;  %s2342_s22 = scalar_lea.vmem %s1848_s21, 256  ;;  %p2347_p5 = scmp.lt.s32.totalorder %s1848_s21, %s1848_s21 }
 0x1aa   :  { %2244 = verf.f32 %v1092_v35  ;;  %v1083_v62 = vmul.f32 0.5, %v1065_v37  ;;  %v1082_v3 = vmul.f32 0.5, %v1024_v38  ;;  %v1084_v7 = vmul.f32 0.5, %v1067_v40  ;;  %p2343_p4 = scmp.ne.s32.totalorder %s1848_s21, %s2342_s22  ;;  %p2348_p6 = scmp.lt.s32.totalorder %s2342_s22, %s2342_s22 }
 0x1ab   :  { %2246 = verf.f32 %v1097_v56 }
 0x1ac   :  { %2248 = verf.f32 %v1099_v41  ;;  %p2349_p7 = por %p2348_p6, %p2347_p5 }
 0x1ad   :  { %2250 = verf.f32 %v1098_v42 }
 0x1ae   :  { %2252 = verf.f32 %v1100_v43  ;;  %p2350_p8 = pnand %p2349_p7, %p2343_p4 }
 0x1b1   :  { %v2239_v44 = vpop.eup %2238 }
 0x1b2   :  { %v2241_v45 = vpop.eup %2240  ;;  %v1121_v48 = vadd.f32 1.0, %v2239_v44 }
 0x1b3   :  { %v2243_v46 = vpop.eup %2242  ;;  %v1123_v52 = vadd.f32 1.0, %v2241_v45 }
 0x1b4   :  { %v2245_v47 = vpop.eup %2244  ;;  %v1122_v55 = vadd.f32 1.0, %v2243_v46  ;;  %v1137_v1 = vmul.f32 %v1121_v48, %v1073_v50 }
 0x1b5   :  { %v2247_v49 = vpop.eup %2246  ;;  %v1124_v61 = vadd.f32 1.0, %v2245_v47  ;;  %v1139_v5 = vmul.f32 %v1123_v52, %v1075_v51 }
 0x1b6   :  { %v2249_v53 = vpop.eup %2248  ;;  %v1129_v58 = vadd.f32 1.0, %v2247_v49  ;;  %v1138_v10 = vmul.f32 %v1122_v55, %v1074_v54 }
 0x1b7   :  { %v2251_v59 = vpop.eup %2250  ;;  %v1131_v63 = vadd.f32 1.0, %v2249_v53  ;;  %v1140_v13 = vmul.f32 %v1124_v61, %v1076_v60 }
 0x1b8   :  { %v2253_v0 = vpop.eup %2252  ;;  %v1145_v2 = vmul.f32 %v1129_v58, %v1081_v57  ;;  %v1130_v4 = vadd.f32 1.0, %v2251_v59 }
 0x1b9   :  { %v1147_v6 = vmul.f32 %v1131_v63, %v1083_v62  ;;  %v1132_v9 = vadd.f32 1.0, %v2253_v0 }
 0x1ba   :  { %v1153_v11 = vpack.c.bf16 %v1145_v2, %v1137_v1  ;;  %v1146_v12 = vmul.f32 %v1130_v4, %v1082_v3 }
 0x1bb   :  { %v1155_v14 = vpack.c.bf16 %v1147_v6, %v1139_v5  ;;  %v1148_v15 = vmul.f32 %v1132_v9, %v1084_v7 }
 0x1bc   :  { %v1154_v16 = vpack.c.bf16 %v1146_v12, %v1138_v10 }
 0x1bd   :  { %v1156_v17 = vpack.c.bf16 %v1148_v15, %v1140_v13 }
 0x1be   :  { %1790 = vmatprep.mubr.bf16.mxu0 %v1154_v16 }
 0x1bf   :  { %1831 = vmatprep.mubr.bf16.mxu1 %v1156_v17  ;;  %1791 = vmatmul.mubr.bf16.vlgmr.msra.gmra.mrb[12].mxu0 %v1153_v11 }
 0x1c0   :  { %1832 = vmatmul.mubr.bf16.vlgmr.msra.gmra.mrb[12].mxu1 %v1155_v14 }
 0x252   :  { %v2072_v18 = vpop.f32.mrb[8].mxu0 }
 0x253   :  { %v2094_v19 = vpop.f32.mrb[8].mxu1  ;;  %v2073_v20 = vpop.f32.mrb[9].mxu0 }
 0x254   :  { %v2074_v21 = vadd.f32 %v2073_v20, %v2072_v18  ;;  %v2095_v22 = vpop.f32.mrb[9].mxu1  ;;  %v2075_v23 = vpop.f32.mrb[10].mxu0 }
 0x255   :  { %v2096_v24 = vadd.f32 %v2095_v22, %v2094_v19  ;;  %v2097_v25 = vpop.f32.mrb[10].mxu1  ;;  %v2076_v26 = vpop.f32.mrb[11].mxu0 }
 0x256   :  { %v1711_v27 = vadd.f32 %v2074_v21, %v1991_v8  ;;  %v2077_v28 = vadd.f32 %v2076_v26, %v2075_v23  ;;  %v2098_v29 = vpop.f32.mrb[11].mxu1 }
 0x257   :  { %v2099_v30 = vadd.f32 %v2098_v29, %v2097_v25 }
 0x258   :  { %v1752_v39 = vadd.f32 %v2096_v24, %v1711_v27  ;;  %v1714_v31 = vadd.f32 %v2077_v28, %v1991_v8 }
 0x25a   :  { %v1755_v32 = vadd.f32 %v2099_v30, %v1714_v31 }
 0x292   :  { %v2116_v33 = vpop.f32.mrb[12].mxu0 }
 0x293   :  { %v2138_v34 = vpop.f32.mrb[12].mxu1  ;;  %v2117_v35 = vpop.f32.mrb[13].mxu0 }
 0x294   :  { %v2118_v36 = vadd.f32 %v2117_v35, %v2116_v33  ;;  %v2139_v56 = vpop.f32.mrb[13].mxu1  ;;  %v2119_v37 = vpop.f32.mrb[14].mxu0 }
 0x295   :  { %v2140_v38 = vadd.f32 %v2139_v56, %v2138_v34  ;;  %v2141_v40 = vpop.f32.mrb[14].mxu1  ;;  %v2120_v41 = vpop.f32.mrb[15].mxu0 }
 0x296   :  { %v1793_v42 = vadd.f32 %v2118_v36, %v1752_v39  ;;  %v2121_v43 = vadd.f32 %v2120_v41, %v2119_v37  ;;  %v2142_v44 = vpop.f32.mrb[15].mxu1 }
 0x297   :  { %v2143_v45 = vadd.f32 %v2142_v44, %v2141_v40 }
 0x298   :  { %v1834_v46 = vadd.f32 %v2140_v38, %v1793_v42  ;;  %v1796_v47 = vadd.f32 %v2121_v43, %v1755_v32 }
 0x29a   :  { %1840 = vst [vmem:[#allocation10] sm:$0xff] %v1834_v46  ;;  %v1837_v48 = vadd.f32 %v2143_v45, %v1796_v47 }
 0x29c   :  { %1841 = vst [vmem:[#allocation10 + $0x8] sm:$0xff] %v1837_v48 }
 0x29d   :  { %2353 = shalt.err (!%p2350_p8)
}
 0x29e   :  { %s2354_s25 = scalar_lea.hbm %s2526_s5, 256 }
 0x29f   :  { %p2355_p9 = scmp.ne.s32.totalorder %s2526_s5, %s2354_s25  ;;  %p2358_p10 = scmp.lt.u32.totalorder %s2354_s25, %s2526_s5 }
 0x2a1   :  { %p2360_p11 = pnand %p2358_p10, %p2355_p9 }
 0x2a3   :  { %2363 = shalt.err (!%p2360_p11)
}
 0x2a4   :  { %1853 = dma.vmem_to_hbm [thread:$0]  %s1848_s21, 256, %s2526_s5, [#allocation4], %s2376_s1, %s2376_s1, %s2377_s17  }
 0x2a5   :  { %2370 = dma.done.wait [#allocation4], 256  }
 0x2a6   :  { %2371 = vsyncadd [#allocation4], 4294967040 }
 0x2a7   :  { %1857 = vsyncpa [#allocation3], 1 }
 0x2a8   :  { %1858 = vsyncpa [#allocation6], 1 }
 0x2a9   :  { %1859 = vsyncpa [#allocation9], 1 }
 0x2aa   :  { %1860 = vsyncpa [#allocation4], 1 }

</bundles_post_ra>
